<compile_context>
chip_gen: v6e
topology: v6e:2x2x1
jax: 0.10.0
libtpu: 0.0.40
codegen_flags: <defaults>
</compile_context>

<pallas_src>
import functools

import jax
import jax.numpy as jnp
from jax.experimental import pallas as pl
from jax.experimental.pallas import tpu as pltpu


def _copy_kernel(x_ref, o_ref):
    # Reference forward is `return x`; the (x - mean)/std math is dead code in
    # the PyTorch module, so the kernel is a pure pass-through copy.
    o_ref[...] = x_ref[...]


def _lane_dense_2d(total_elems):
    """Pick (rows, cols) with cols a wide multiple of 128 (unmasked stores).

    Prefers the widest cols that still leaves rows >= 8 (full sublanes).
    Returns None when the element count is not 128-divisible — in that case
    the identity needs no kernel at all.
    """
    if total_elems % 128 != 0:
        return None
    candidates = (32768, 16384, 8192, 4096, 2048, 1024, 512, 256, 128)
    for cols in candidates:
        if total_elems % cols == 0 and total_elems // cols >= 8:
            return total_elems // cols, cols
    # Tiny tensor: rows < 8 is unavoidable; the block then spans the full row
    # extent (legal: block dim equals full array dim).
    for cols in candidates:
        if total_elems % cols == 0:
            return total_elems // cols, cols
    return None


def _target_block_bytes():
    """Per-generation block size for this 1-in/1-out double-buffered copy."""
    try:
        kind = jax.devices()[0].device_kind.lower()
    except Exception:
        kind = ""
    if "v5" in kind:
        return 3 * 1024 * 1024   # 4 live buffers x 3 MiB = 12 MiB < 16 MiB scoped default
    return 4 * 1024 * 1024       # v6e/v7x: 16 MiB total, well under 32 MiB scoped default


@functools.partial(jax.jit, donate_argnums=0)
def normalize_forward(x, mean, std):
    """Pallas-backed forward of `Normalize`.

    Args:
      x:    (N, C, H, W) array (any float dtype). Donated (aliased in place).
      mean: (C,) array  -- stored but unused by the reference forward.
      std:  (C,) array  -- stored but unused by the reference forward.

    Returns:
      Array identical to x (same shape, dtype, values).
    """
    del mean, std  # unused by the reference forward (`return x`)
    # TODO(synk): if real (x - mean)/std normalization is ever enabled in the
    # reference, fuse it into _copy_kernel (VPU mul/add rides in idle slots of
    # this HBM-bound copy) rather than adding a second elementwise pass.
    shape = x.shape
    total = 1
    for d in shape:
        total *= int(d)
    dsize = jnp.dtype(x.dtype).itemsize

    dims = _lane_dense_2d(total)
    if dims is None:
        # Not 128-divisible: a kernel would do masked partial stores for the
        # whole tensor; the identity forward needs no kernel here.
        return x

    rows, cols = dims
    x2d = x.reshape(rows, cols)

    tile_r = int(_target_block_bytes() // (cols * dsize)) // 8 * 8
    tile_r = max(8, tile_r)
    tile_r = min(tile_r, rows)
    if rows < 8:
        tile_r = rows  # full-extent block for tiny tensors

    grid = (pl.cdiv(rows, tile_r),)
    spec = pl.BlockSpec((tile_r, cols), lambda i: (i, 0))

    out2d = pl.pallas_call(
        _copy_kernel,
        out_shape=jax.ShapeDtypeStruct((rows, cols), x.dtype),
        grid=grid,
        in_specs=[spec],
        out_specs=spec,
        input_output_aliases={0: 0},  # real alias: x is donated at the jit boundary
        cost_estimate=pl.CostEstimate(
            flops=0, transcendentals=0, bytes_accessed=2 * total * dsize),
        compiler_params=pltpu.CompilerParams(
            dimension_semantics=("parallel",),
        ),
    )(x2d)

    return out2d.reshape(shape)


if __name__ == "__main__":
    key = jax.random.PRNGKey(0)
    N, C, H, W = 2, 4, 16, 16

    # Deterministic "parameters" mirroring __init__(mean, std).
    mean = jnp.arange(C, dtype=jnp.float32) * 0.1   # (C,)
    std = jnp.ones((C,), dtype=jnp.float32) * 0.5   # (C,)

    x = jax.random.normal(key, (N, C, H, W), dtype=jnp.float32)
    # x is donated into the jitted forward (so the in-place alias is real);
    # regenerate an identical independent copy for the correctness check.
    x_expected = jax.random.normal(key, (N, C, H, W), dtype=jnp.float32)

    y = normalize_forward(x, mean, std)
    y = jax.block_until_ready(y)

    # Reference forward is identity: check exact reproduction.
    assert y.shape == x_expected.shape and y.dtype == x_expected.dtype
    assert bool(jnp.all(y == x_expected))

    print("KERNEL_OK")
</pallas_src>

<mosaic_0001>
module attributes {stable_mosaic.version = 11 : i64} {
  func.func @_copy_kernel(%arg0: i32, %arg1: memref<8x256xf32, #tpu.memory_space<vmem>>, %arg2: memref<8x256xf32, #tpu.memory_space<vmem>>) attributes {dimension_semantics = [#tpu.dimension_semantics<parallel>], iteration_bounds = array<i64: 1>, scalar_prefetch = 0 : i64, scratch_operands = 0 : i64, tpu.core_type = #tpu.core_type<tc>, window_params = [{transform_indices = @transform_0, window_bounds = array<i64: 8, 256>}, {transform_indices = @transform_1, window_bounds = array<i64: 8, 256>}]} {
    %c0 = arith.constant 0 : index
    %c0_0 = arith.constant 0 : index
    %0 = vector.load %arg1[%c0, %c0_0] : memref<8x256xf32, #tpu.memory_space<vmem>>, vector<8x256xf32>
    %c0_1 = arith.constant 0 : index
    %c0_2 = arith.constant 0 : index
    %1 = vector.load %arg2[%c0_1, %c0_2] : memref<8x256xf32, #tpu.memory_space<vmem>>, vector<8x256xf32>
    tpu.vector_store %arg2[%c0_1, %c0_2], %0 {strides = array<i32>} : memref<8x256xf32, #tpu.memory_space<vmem>>, vector<8x256xf32>,
    return
  }
  func.func @transform_0(%arg0: i32) -> (i32, i32) {
    %c0_i32 = arith.constant 0 : i32
    %c0_i32_0 = arith.constant 0 : i32
    return %arg0, %c0_i32 : i32, i32
  }
  func.func @transform_1(%arg0: i32) -> (i32, i32) {
    %c0_i32 = arith.constant 0 : i32
    %c0_i32_0 = arith.constant 0 : i32
    return %arg0, %c0_i32 : i32, i32
  }
}

</mosaic_0001>

<bundles_post_ra>
// kernel: normalize_forward.1
= control target key start
LH: loop header
LB: loop body
LE: loop exit
PB: predicated region body
PF: predicated region fallthrough
CT: control target
= control target key end

     0   :  { %s38_s0 = inlined_call_operand.vmem [shape: f32[8,256], index: 0, kind: input, shape index: {}, may-alias: {0,1}]   ;;  %s39_s1 = inlined_call_operand.vmem [shape: f32[8,256], index: 1, kind: output, shape index: {}, may-alias: {0,1}]  }
   0x1   :  { %v8_v0 = vld [vmem:[%s38_s0] sm:$0xff]  ;;  %v9_v1 = vld [vmem:[%s38_s0 + $0x8] sm:$0xff] }
   0x2   :  { %10 = vst [vmem:[%s39_s1] sm:$0xff] %v8_v0  ;;  %11 = vst [vmem:[%s39_s1 + $0x8] sm:$0xff] %v9_v1 }

</bundles_post_ra>
